<compile_context>
chip_gen: v7x
topology: tpu7x:2x2x1
jax: 0.10.0
libtpu: 0.0.40
codegen_flags: <defaults>
</compile_context>

<pallas_src>
import functools

import jax
import jax.numpy as jnp
from jax.experimental import pallas as pl
from jax.experimental.pallas import tpu as pltpu


def _slp_kernel(x_ref, w_ref, b_ref, o_ref, *, nonlinearity):
    # x_ref : (tm, L) packed input rows (L = k*F, lane-dense)
    # w_ref : (L, L)  block-diagonal kron(I_k, W^T)  (transpose folded in)
    # b_ref : (1, L)  packed bias
    # o_ref : (tm, L) packed output rows
    x = x_ref[...]
    if x.dtype != w_ref.dtype:
        # optional bf16 compute path (v5e MXU guard); cast hides under DMA.
        x = x.astype(w_ref.dtype)
    z = jnp.dot(x, w_ref[...], preferred_element_type=jnp.float32)
    z = z + b_ref[...].astype(jnp.float32)

    if nonlinearity == "silu":
        # sigmoid(z) = 0.5*(tanh(z/2)+1): EUP transcendental, no VPU divide.
        out = z * (0.5 * jnp.tanh(0.5 * z) + 0.5)
    elif nonlinearity == "relu":
        out = jnp.maximum(z, 0.0)
    elif nonlinearity == "tanh":
        out = jnp.tanh(z)
    elif nonlinearity == "elu":
        # exp(min(z,0)) keeps the discarded branch finite (safe if differentiated).
        out = jnp.where(z > 0.0, z, jnp.exp(jnp.minimum(z, 0.0)) - 1.0)
    elif nonlinearity == "none":
        out = z
    else:
        raise ValueError(f"unknown nonlinearity: {nonlinearity}")

    o_ref[...] = out.astype(o_ref.dtype)


def _vmem_budget_bytes():
    """Generation-aware VMEM budget (~75% of physical: ~48 MiB v7x, ~96 MiB v5e/v6e)."""
    phys = None
    try:
        phys = getattr(pltpu.get_tpu_info(), "vmem_capacity_bytes", None)
    except Exception:
        phys = None
    if not phys:
        phys = 64 << 20  # conservative fallback = v7x per-core VMEM
    return int(phys) * 3 // 4


def single_layer_perceptron(x, weight, bias, *, nonlinearity="silu",
                            max_tile_rows=8192, compute_dtype=None):
    """Pallas forward of SingleLayerPerceptron.

    x      : (batch, time, n_channels, 2)
    weight : (2C, 2C)  torch nn.Linear layout (out_features, in_features)
    bias   : (2C,)
    compute_dtype : optionally cast matmul operands (e.g. jnp.bfloat16 on v5e).
    """
    batch, time, n_channels, two = x.shape
    assert two == 2
    F = 2 * n_channels
    M = batch * time
    assert weight.shape == (F, F) and bias.shape == (F,)

    # ---- lane packing: k rows of width F per slab row (lane-dense IO) -------
    k = max(1, 128 // F) if F <= 128 else 1
    L = k * F

    x_flat = x.reshape(M, F)                       # free bitcast
    rem = M % k
    if rem == 0:
        M_pack = M // k
        x_slab = x_flat.reshape(M_pack, L)         # free bitcast (fast path)
    else:
        # TODO(synk): ragged tail (M % k rows) still pays one pad copy of x and
        # one slice copy of y; a prefix-kernel + tiny jnp epilogue would avoid
        # it at the cost of an output concat.  Aligned M is fully copy-free.
        pad = k - rem
        M_pack = (M + pad) // k
        x_slab = jnp.pad(x_flat, ((0, pad), (0, 0))).reshape(M_pack, L)

    # Block-diagonal weight with the transpose folded in: y = x_packed @ kron(I_k, W^T).
    w_bd = jnp.kron(jnp.eye(k, dtype=weight.dtype), weight.T)   # (L, L)
    b_packed = jnp.tile(bias, k).reshape(1, L)
    if compute_dtype is not None:
        w_bd = w_bd.astype(compute_dtype)          # tiny, one-time cast

    in_item = jnp.dtype(x.dtype).itemsize
    out_item = in_item
    w_item = jnp.dtype(w_bd.dtype).itemsize
    resident_bytes = 2 * (L * L * w_item
                          + L * max(4, jnp.dtype(b_packed.dtype).itemsize))

    vmem_budget = _vmem_budget_bytes()

    # ---- row-tile size: large enough to amortize the ~0.35 us/step overhead,
    #      but keep >= ~4 grid steps (DMA overlap + megacore) and fit VMEM. ----
    if M_pack <= 8:
        tm = M_pack                                # single full block
    else:
        tm = min(max_tile_rows, pl.cdiv(M_pack, 4))
        tm = max(8, (tm // 8) * 8)
        # double-buffered in/out tiles + ~3 f32 tile-sized internal temporaries
        per_row = L * (2 * in_item + 2 * out_item + 3 * 4)
        tm_cap = (vmem_budget - resident_bytes - (1 << 20)) // per_row
        tm = max(8, min(tm, (tm_cap // 8) * 8))
    grid = (pl.cdiv(M_pack, tm),)                  # ragged last block is masked

    vmem_limit = (2 * tm * L * in_item + 2 * tm * L * out_item
                  + 3 * tm * L * 4 + resident_bytes + (1 << 20))
    vmem_limit = int(min(max(vmem_limit, 16 << 20), vmem_budget))

    transc = M_pack * L if nonlinearity in ("silu", "tanh", "elu") else 0
    cost = pl.CostEstimate(
        flops=int(2 * M_pack * L * L + 4 * M_pack * L),
        transcendentals=int(transc),
        bytes_accessed=int(M_pack * L * (in_item + out_item)
                           + L * L * w_item + L * 4),
    )

    kernel = functools.partial(_slp_kernel, nonlinearity=nonlinearity)

    out_slab = pl.pallas_call(
        kernel,
        out_shape=jax.ShapeDtypeStruct((M_pack, L), x.dtype),
        grid_spec=pltpu.PrefetchScalarGridSpec(
            num_scalar_prefetch=0,
            grid=grid,
            in_specs=[
                pl.BlockSpec((tm, L), lambda i: (i, 0)),   # x rows: tiled, pipelined
                pl.BlockSpec((L, L), lambda i: (0, 0)),    # weight: VMEM-resident
                pl.BlockSpec((1, L), lambda i: (0, 0)),    # bias:   VMEM-resident
            ],
            out_specs=pl.BlockSpec((tm, L), lambda i: (i, 0)),
        ),
        compiler_params=pltpu.CompilerParams(
            dimension_semantics=("parallel",),      # megacore-shardable on v7x
            vmem_limit_bytes=vmem_limit,
        ),
        cost_estimate=cost,
    )(x_slab, w_bd, b_packed)

    out_flat = out_slab.reshape(M_pack * k, F)     # free bitcast
    if rem:
        out_flat = out_flat[:M]
    return out_flat.reshape(batch, time, n_channels, 2)


def _reference(x, weight, bias, nonlinearity="silu"):
    batch, time, n_channels, _ = x.shape
    F = 2 * n_channels
    z = x.reshape(batch * time, F) @ weight.T + bias
    if nonlinearity == "silu":
        z = jax.nn.silu(z)
    elif nonlinearity == "relu":
        z = jax.nn.relu(z)
    elif nonlinearity == "tanh":
        z = jnp.tanh(z)
    elif nonlinearity == "elu":
        z = jax.nn.elu(z)
    return z.reshape(x.shape)


if __name__ == "__main__":
    key = jax.random.PRNGKey(0)
    k1, k2, k3, k4, k5 = jax.random.split(key, 5)

    # --- case 1: module-sized example, identity init, aligned M (copy-free) --
    batch, time, n_channels = 2, 8, 4              # F=8, k=16, M=16
    F = 2 * n_channels
    x = jax.random.normal(k1, (batch, time, n_channels, 2), dtype=jnp.float32)
    w_eye = jnp.eye(F, dtype=jnp.float32)          # init.eye_
    b_zero = jnp.zeros((F,), dtype=jnp.float32)    # init.zeros_
    y = single_layer_perceptron(x, w_eye, b_zero)
    jax.block_until_ready(y)
    assert y.shape == x.shape
    assert jnp.allclose(y, _reference(x, w_eye, b_zero), atol=1e-5, rtol=1e-5), \
        "mismatch vs reference (identity init)"

    # --- case 2: random weights, ragged M, multi-tile grid + partial block ---
    batch2, time2 = 3, 163                         # M=489 (489 % 16 = 9)
    x2 = jax.random.normal(k2, (batch2, time2, n_channels, 2), dtype=jnp.float32)
    w2 = 0.1 * jax.random.normal(k3, (F, F), dtype=jnp.float32)
    b2 = jnp.linspace(-0.5, 0.5, F, dtype=jnp.float32)
    y2 = single_layer_perceptron(x2, w2, b2, max_tile_rows=8)   # 4 grid steps
    jax.block_until_ready(y2)
    assert y2.shape == x2.shape
    assert jnp.allclose(y2, _reference(x2, w2, b2), atol=1e-4, rtol=1e-4), \
        "mismatch vs reference (random weights, ragged M, tiled grid)"

    # --- case 3: F that does not divide 128 (partial lane packing) + elu -----
    nc3 = 6                                        # F=12, k=10, L=120
    F3 = 2 * nc3
    x3 = jax.random.normal(k4, (2, 10, nc3, 2), dtype=jnp.float32)  # M=20 aligned
    w3 = 0.2 * jax.random.normal(k5, (F3, F3), dtype=jnp.float32)
    b3 = 0.1 * jnp.ones((F3,), dtype=jnp.float32)
    y3 = single_layer_perceptron(x3, w3, b3, nonlinearity="elu")
    jax.block_until_ready(y3)
    assert y3.shape == x3.shape
    assert jnp.allclose(y3, _reference(x3, w3, b3, "elu"), atol=1e-4, rtol=1e-4), \
        "mismatch vs reference (F=12 partial packing, elu)"

    print("KERNEL_OK")
</pallas_src>

<mosaic_0001>
module attributes {stable_mosaic.version = 11 : i64} {
  func.func @_slp_kernel(%arg0: i32, %arg1: memref<1x128xf32, #tpu.memory_space<vmem>>, %arg2: memref<128x128xf32, #tpu.memory_space<vmem>>, %arg3: memref<1x128xf32, #tpu.memory_space<vmem>>, %arg4: memref<1x128xf32, #tpu.memory_space<vmem>>) attributes {dimension_semantics = [#tpu.dimension_semantics<parallel>], iteration_bounds = array<i64: 1>, scalar_prefetch = 0 : i64, scratch_operands = 0 : i64, tpu.core_type = #tpu.core_type<tc>, window_params = [{transform_indices = @transform_0, window_bounds = array<i64: 1, 128>}, {pipeline_mode = #tpu.pipeline_mode<synchronous>, transform_indices = @transform_1, window_bounds = array<i64: 128, 128>}, {pipeline_mode = #tpu.pipeline_mode<synchronous>, transform_indices = @transform_2, window_bounds = array<i64: 1, 128>}, {transform_indices = @transform_3, window_bounds = array<i64: 1, 128>}]} {
    %c0 = arith.constant 0 : index
    %c0_0 = arith.constant 0 : index
    %0 = vector.load %arg1[%c0, %c0_0] : memref<1x128xf32, #tpu.memory_space<vmem>>, vector<1x128xf32>
    %c0_1 = arith.constant 0 : index
    %c0_2 = arith.constant 0 : index
    %1 = vector.load %arg2[%c0_1, %c0_2] : memref<128x128xf32, #tpu.memory_space<vmem>>, vector<128x128xf32>
    %cst = arith.constant dense<0.000000e+00> : vector<1x128xf32>
    %2 = tpu.matmul %0, %1, %cst {dimension_numbers = #tpu.dot_dimension_numbers<[1], [0], [0], [1], [0, 0, 1, 1], [], []>} : vector<1x128xf32>, vector<128x128xf32>, vector<1x128xf32> -> vector<1x128xf32>
    %c0_3 = arith.constant 0 : index
    %c0_4 = arith.constant 0 : index
    %3 = vector.load %arg3[%c0_3, %c0_4] : memref<1x128xf32, #tpu.memory_space<vmem>>, vector<1x128xf32>
    %4 = arith.addf %2, %3 : vector<1x128xf32>
    %cst_5 = arith.constant 5.000000e-01 : f32
    %5 = vector.broadcast %cst_5 : f32 to vector<1x128xf32>
    %6 = arith.mulf %5, %4 : vector<1x128xf32>
    %7 = math.tanh %6 : vector<1x128xf32>
    %cst_6 = arith.constant 5.000000e-01 : f32
    %8 = vector.broadcast %cst_6 : f32 to vector<1x128xf32>
    %9 = arith.mulf %8, %7 : vector<1x128xf32>
    %cst_7 = arith.constant 5.000000e-01 : f32
    %10 = vector.broadcast %cst_7 : f32 to vector<1x128xf32>
    %11 = arith.addf %9, %10 : vector<1x128xf32>
    %12 = arith.mulf %4, %11 : vector<1x128xf32>
    %c0_8 = arith.constant 0 : index
    %c0_9 = arith.constant 0 : index
    %13 = vector.load %arg4[%c0_8, %c0_9] : memref<1x128xf32, #tpu.memory_space<vmem>>, vector<1x128xf32>
    tpu.vector_store %arg4[%c0_8, %c0_9], %12 {strides = array<i32>} : memref<1x128xf32, #tpu.memory_space<vmem>>, vector<1x128xf32>,
    return
  }
  func.func @transform_0(%arg0: i32) -> (i32, i32) {
    %c0_i32 = arith.constant 0 : i32
    %c0_i32_0 = arith.constant 0 : i32
    return %arg0, %c0_i32 : i32, i32
  }
  func.func @transform_1(%arg0: i32) -> (i32, i32) {
    %c0_i32 = arith.constant 0 : i32
    %c0_i32_0 = arith.constant 0 : i32
    %c0_i32_1 = arith.constant 0 : i32
    return %c0_i32, %c0_i32_0 : i32, i32
  }
  func.func @transform_2(%arg0: i32) -> (i32, i32) {
    %c0_i32 = arith.constant 0 : i32
    %c0_i32_0 = arith.constant 0 : i32
    %c0_i32_1 = arith.constant 0 : i32
    return %c0_i32, %c0_i32_0 : i32, i32
  }
  func.func @transform_3(%arg0: i32) -> (i32, i32) {
    %c0_i32 = arith.constant 0 : i32
    %c0_i32_0 = arith.constant 0 : i32
    return %arg0, %c0_i32 : i32, i32
  }
}

</mosaic_0001>

<bundles_post_ra>
// kernel: tpu_custom_call.1
= control target key start
LH: loop header
LB: loop body
LE: loop exit
PB: predicated region body
PF: predicated region fallthrough
CT: control target
= control target key end

     0   :  { %8 = vsyncpa [#allocation3], 0  ;;  %s383_s0 = inlined_call_operand.hbm [shape: f32[1,128], index: 0, kind: input, shape index: {}]   ;;  %s384_s1 = inlined_call_operand.hbm [shape: f32[128,128], index: 1, kind: input, shape index: {}]   ;;  %s385_s2 = inlined_call_operand.vmem [shape: f32[1,128], index: 2, kind: input, shape index: {}]   ;;  %s386_s3 = inlined_call_operand.hbm [shape: f32[1,128], index: 3, kind: output, shape index: {}]  }
   0x1   :  { %9 = vsyncpa [#allocation6], 0 }
   0x2   :  { %10 = vsyncpa [#allocation4], 0  ;;  %s309_s12 = smov [#allocation2]   ;;  %s310_s14 = smov [#allocation5]  }
   0x3   :  { %s17_s13 = sshll.u32 %s309_s12, 4  ;;  %s26_s15 = sshll.u32 %s310_s14, 4  ;;  %s18_s13 = int_to_ptr.vmem [resolvable:$true] %s17_s13  ;;  %s337_s15 = int_to_ptr.vmem [resolvable:$true] %s26_s15 }
   0x4   :  { %s237_s18 = scalar_lea.hbm %s383_s0, 16 }
   0x5   :  { %p238_p0 = scmp.ne.s32.totalorder %s383_s0, %s237_s18  ;;  %p241_p1 = scmp.lt.u32.totalorder %s237_s18, %s383_s0 }
   0x7   :  { %p243_p2 = pnand %p241_p1, %p238_p0 }
   0x9   :  { %246 = shalt.err (!%p243_p2)
}
   0xa   :  { %s247_s23 = scalar_lea.vmem %s18_s13, 16  ;;  %s251_s24 = scalar_lea.vmem %s18_s13, 32 }
   0xb   :  { %p248_p3 = scmp.ne.s32.totalorder %s18_s13, %s247_s23  ;;  %p252_p4 = scmp.lt.s32.totalorder %s18_s13, %s18_s13 }
   0xc   :  { %p253_p5 = scmp.lt.s32.totalorder %s251_s24, %s247_s23 }
   0xe   :  { %p254_p6 = por %p253_p5, %p252_p4 }
  0x10   :  { %p255_p7 = pnand %p254_p6, %p248_p3 }
  0x12   :  { %258 = shalt.err (!%p255_p7)
}
  0x13   :  { %20 = dma.hbm_to_vmem [thread:$0]  %s383_s0, 16, %s18_s13, [#allocation3]  }
  0x14   :  { %s259_s29 = scalar_lea.hbm %s384_s1, 2048 }
  0x15   :  { %p260_p8 = scmp.ne.s32.totalorder %s384_s1, %s259_s29  ;;  %p263_p9 = scmp.lt.u32.totalorder %s259_s29, %s384_s1 }
  0x17   :  { %p265_p10 = pnand %p263_p9, %p260_p8 }
  0x19   :  { %268 = shalt.err (!%p265_p10)
}
  0x1a   :  { %s269_s7 = scalar_lea.vmem %s337_s15, 2048  ;;  %p274_p12 = scmp.lt.s32.totalorder %s337_s15, %s337_s15 }
  0x1b   :  { %p270_p11 = scmp.ne.s32.totalorder %s337_s15, %s269_s7  ;;  %p275_p13 = scmp.lt.s32.totalorder %s269_s7, %s269_s7 }
  0x1d   :  { %p276_p0 = por %p275_p13, %p274_p12 }
  0x1f   :  { %p277_p1 = pnand %p276_p0, %p270_p11 }
  0x21   :  { %280 = shalt.err (!%p277_p1)
}
  0x22   :  { %s311_s0 = smov 128   ;;  %s312_s8 = smov 8  }
  0x23   :  { %32 = dma.hbm_to_vmem [thread:$0]  %s384_s1, 2048, %s337_s15, [#allocation6], %s311_s0, %s311_s0, %s312_s8  }
  0x24   :  { %303 = dma.done.wait [#allocation3], 16  }
  0x25   :  { %304 = vsyncadd [#allocation3], 4294967280 }
  0x26   :  { %305 = dma.done.wait [#allocation6], 2048  }
  0x27   :  { %306 = vsyncadd [#allocation6], 4294965248  ;;  %v313_v0 = vmov 0.0|0.0   ;;  %vm314_vm0 = vmmov 0   ;;  %v315_v1 = vmov 0.0   ;;  %v42_v2 = vld [vmem:[#allocation5] sm:$0xff] }
  0x28   :  { %203 = vmatprep.subr.bf16.mxu0 %v313_v0  ;;  %200 = vmatprep.mubr.msk.f32.mxu0 %vm314_vm0, %v315_v1  ;;  %v43_v3 = vld [vmem:[#allocation5 + $0x8] sm:$0xff]  ;;  %v44_v4 = vld [vmem:[#allocation5 + $0x10] sm:$0xff]  ;;  %v45_v6 = vld [vmem:[#allocation5 + $0x18] sm:$0xff]  ;;  %s316_s12 = smov [#allocation7]  }
  0x29   :  { %v204_v5 = vpack.c.bf16 %v43_v3, %v42_v2  ;;  %v207_v7 = vpack.c.bf16 %v45_v6, %v44_v4  ;;  %v46_v8 = vld [vmem:[#allocation5 + $0x20] sm:$0xff]  ;;  %v47_v9 = vld [vmem:[#allocation5 + $0x28] sm:$0xff]  ;;  %v48_v11 = vld [vmem:[#allocation5 + $0x30] sm:$0xff]  ;;  %s141_s13 = sshll.u32 %s316_s12, 4  ;;  %s142_s13 = int_to_ptr.vmem [resolvable:$true] %s141_s13 }
  0x2a   :  { %v210_v10 = vpack.c.bf16 %v47_v9, %v46_v8  ;;  %v49_v12 = vld [vmem:[#allocation5 + $0x38] sm:$0xff]  ;;  %v50_v14 = vld [vmem:[#allocation5 + $0x40] sm:$0xff]  ;;  %v51_v15 = vld [vmem:[#allocation5 + $0x48] sm:$0xff]  ;;  %s281_s14 = scalar_lea.vmem %s142_s13, 16  ;;  %s285_s15 = scalar_lea.vmem %s142_s13, 32 }
  0x2b   :  { %205 = vmatpush3.bf16.msra.mxu0 %v204_v5  ;;  %v213_v13 = vpack.c.bf16 %v49_v12, %v48_v11  ;;  %v216_v16 = vpack.c.bf16 %v51_v15, %v50_v14  ;;  %v52_v17 = vld [vmem:[#allocation5 + $0x50] sm:$0xff]  ;;  %v53_v18 = vld [vmem:[#allocation5 + $0x58] sm:$0xff]  ;;  %v54_v20 = vld [vmem:[#allocation5 + $0x60] sm:$0xff]  ;;  %p282_p2 = scmp.ne.s32.totalorder %s142_s13, %s281_s14  ;;  %p286_p3 = scmp.lt.s32.totalorder %s142_s13, %s142_s13 }
  0x2c   :  { %206 = vmatprep.subr.bf16.mxu0 %v313_v0  ;;  %v219_v19 = vpack.c.bf16 %v53_v18, %v52_v17  ;;  %v55_v21 = vld [vmem:[#allocation5 + $0x68] sm:$0xff]  ;;  %v56_v23 = vld [vmem:[#allocation5 + $0x70] sm:$0xff]  ;;  %v57_v24 = vld [vmem:[#allocation5 + $0x78] sm:$0xff]  ;;  %p287_p4 = scmp.lt.s32.totalorder %s285_s15, %s281_s14 }
  0x2d   :  { %v222_v22 = vpack.c.bf16 %v55_v21, %v54_v20  ;;  %v225_v25 = vpack.c.bf16 %v57_v24, %v56_v23  ;;  %v41_v26 = vld [vmem:[#allocation2] sm:$0x1] }
  0x2e   :  { %v58_v27 = vld [vmem:[%s385_s2] sm:$0x1]  ;;  %p288_p5 = por %p287_p4, %p286_p3 }
  0x2f   :  { %208 = vmatpush3.bf16.msra.mxu0 %v207_v7 }
  0x30   :  { %209 = vmatprep.subr.bf16.mxu0 %v313_v0  ;;  %p289_p6 = pnand %p288_p5, %p282_p2 }
  0x33   :  { %211 = vmatpush3.bf16.msra.mxu0 %v210_v10 }
  0x34   :  { %212 = vmatprep.subr.bf16.mxu0 %v313_v0 }
  0x37   :  { %214 = vmatpush3.bf16.msra.mxu0 %v213_v13 }
  0x38   :  { %215 = vmatprep.subr.bf16.mxu0 %v313_v0 }
  0x3b   :  { %217 = vmatpush3.bf16.msra.mxu0 %v216_v16 }
  0x3c   :  { %218 = vmatprep.subr.bf16.mxu0 %v313_v0 }
  0x3f   :  { %220 = vmatpush3.bf16.msra.mxu0 %v219_v19 }
  0x40   :  { %221 = vmatprep.subr.bf16.mxu0 %v313_v0 }
  0x43   :  { %223 = vmatpush3.bf16.msra.mxu0 %v222_v22 }
  0x44   :  { %224 = vmatprep.subr.bf16.mxu0 %v313_v0 }
  0x47   :  { %226 = vmatpush3.bf16.msra.mxu0 %v225_v25 }
  0x4a   :  { %201 = vmatmul.mubr.f32.vlgmr.msra.gmra.mrb[0].mxu0 %v41_v26 }
 0x11d   :  { %v125_v28 = vpop.f32.mrb[0].mxu0 }
 0x11e   :  { %v126_v29 = vadd.f32 %v125_v28, %v58_v27  ;;  %v202_v30 = vpop.f32.mrb[1].mxu0 }
 0x120   :  { %v129_v31 = vmul.f32 0.5, %v126_v29 }
 0x122   :  { %235 = vtanh.f32 %v129_v31 }
 0x12c   :  { %v236_v32 = vpop.eup %235 }
 0x12d   :  { %v131_v33 = vmul.f32 0.5, %v236_v32 }
 0x12f   :  { %v132_v34 = vadd.f32 0.5, %v131_v33 }
 0x131   :  { %v133_v35 = vmul.f32 %v132_v34, %v126_v29 }
 0x133   :  { %134 = vst [vmem:[#allocation7] sm:$0x1] %v133_v35 }
 0x134   :  { %292 = shalt.err (!%p289_p6)
}
 0x135   :  { %s293_s17 = scalar_lea.hbm %s386_s3, 16 }
 0x136   :  { %p294_p7 = scmp.ne.s32.totalorder %s386_s3, %s293_s17  ;;  %p297_p8 = scmp.lt.u32.totalorder %s293_s17, %s386_s3 }
 0x138   :  { %p299_p9 = pnand %p297_p8, %p294_p7 }
 0x13a   :  { %302 = shalt.err (!%p299_p9)
}
 0x13b   :  { %144 = dma.vmem_to_hbm [thread:$0]  %s142_s13, 16, %s386_s3, [#allocation4]  }
 0x13c   :  { %307 = dma.done.wait [#allocation4], 16  }
 0x13d   :  { %308 = vsyncadd [#allocation4], 4294967280 }
 0x13e   :  { %148 = vsyncpa [#allocation3], 1 }
 0x13f   :  { %149 = vsyncpa [#allocation6], 1 }
 0x140   :  { %150 = vsyncpa [#allocation4], 1 }

</bundles_post_ra>
